<compile_context>
chip_gen: v5e
topology: v5e:2x2
jax: 0.10.0
libtpu: 0.0.40
codegen_flags: <defaults>
</compile_context>

<pallas_src>
import functools

import jax
import jax.numpy as jnp
from jax.experimental import pallas as pl
from jax.experimental.pallas import tpu as pltpu


def _global_push_plus_kernel(feat_ref, bcent_ref, labels_ref, centers_ref,
                             margin_ref, out_ref,
                             inv_ref, pos_ref, lsum_ref, cnt_ref,
                             *, soft_margin, b_real, c_real, tile_c,
                             b_padded, c_padded):
    s = pl.program_id(0)              # shard axis ("parallel": dual-TC on v7x)
    j = pl.program_id(1)              # C tile within shard ("arbitrary")
    n_j = pl.num_programs(1)

    # ---- init (first C tile of this shard): row norms, pos sims, accums ----
    @pl.when(j == 0)
    def _init():
        f32 = feat_ref[...].astype(jnp.float32)                  # [B, D]
        sumsq = jnp.sum(f32 * f32, axis=1, keepdims=True)        # [B, 1]
        # F.normalize eps: x / max(||x||,1e-12) == x * rsqrt(max(||x||^2,1e-24))
        inv = jax.lax.rsqrt(jnp.maximum(sumsq, 1e-24))
        inv_ref[...] = inv
        bc = bcent_ref[...].astype(jnp.float32)                  # centers[labels]
        pos = jnp.sum(f32 * bc, axis=1, keepdims=True) * inv     # [B, 1]
        if b_padded:
            # Fold the row-padding mask into pos once: padded rows get a huge
            # positive "similarity" -> raw ~ -1e30 -> losses <= 0 -> never
            # counted.  Removes the per-tile row iota/compare entirely.
            row_ids = jax.lax.broadcasted_iota(jnp.int32, pos.shape, 0)
            pos = jnp.where(row_ids < b_real, pos, 1e30)
        pos_ref[...] = pos
        lsum_ref[...] = jnp.zeros_like(lsum_ref)
        cnt_ref[...] = jnp.zeros_like(cnt_ref)

    # ---- MXU: contract over D, no transpose, operands in input dtype -------
    sim_raw = jax.lax.dot_general(
        feat_ref[...], centers_ref[...],
        dimension_numbers=(((1,), (1,)), ((), ())),
        preferred_element_type=jnp.float32)                      # [B, tC]
    # raw = pos_distance - neg_distance = (1 - pos_sim) - (1 - sim) = sim - pos
    raw = sim_raw * inv_ref[...] - pos_ref[...]                  # [B, tC]

    if soft_margin:
        # margin is intentionally unused here (matches the torchreid module).
        losses = jnp.logaddexp(0.0, raw)                         # softplus
    else:
        losses = margin_ref[0, 0] + raw

    tile_idx = s * n_j + j                                       # global C tile
    col_ids = (jax.lax.broadcasted_iota(jnp.int32, (1, tile_c), 1)
               + tile_idx * tile_c)                              # [1, tC]
    valid = (labels_ref[...] != col_ids) & (losses > 0.0)        # [B, tC]
    if c_padded:
        valid = valid & (col_ids < c_real)                       # C lane padding
    valid_f = valid.astype(jnp.float32)

    lsum_ref[...] += jnp.sum(losses * valid_f, axis=1, keepdims=True)
    cnt_ref[...] += jnp.sum(valid_f, axis=1, keepdims=True)

    # ---- epilogue (last C tile of this shard): emit partial (sum, count) ---
    @pl.when(j == n_j - 1)
    def _fin():
        s_val = jnp.sum(lsum_ref[...])
        n_val = jnp.sum(cnt_ref[...])
        lane = jax.lax.broadcasted_iota(jnp.int32, (8, 128), 1)
        out_ref[0] = jnp.where(lane == 0, s_val,
                               jnp.where(lane == 1, n_val, 0.0))


def _round_up(x, m):
    return (x + m - 1) // m * m


@functools.lru_cache(maxsize=None)
def _build_gpp_fn(b, d, c, feat_dtype, soft_margin, tc_cap_override=None):
    """Build (once per config) a jitted wrapper around the Pallas kernel."""
    dtype = jnp.dtype(feat_dtype)
    itemsize = dtype.itemsize

    d_pad = _round_up(d, 128)                         # lane-dense loads / MXU feed
    b_pad = _round_up(b, 16 if itemsize < 4 else 8)   # bf16 packs 2 rows/sublane

    # ---- VMEM budget -> C tile size.  24 MiB keeps v7x (64 MiB physical)
    # comfortable while still allowing 1-2K-wide tiles on v5e/v6e. -----------
    budget = 24 * 1024 * 1024
    resident = 2 * (2 * b_pad * d_pad * itemsize) + 2 * (b_pad * 4)  # dbl-buffered
    avail = max(budget - resident - 512 * 1024, 2 * 128 * d_pad * itemsize)
    tc_cap = max(128, min(2048, (avail // (2 * d_pad * itemsize)) // 128 * 128))
    if tc_cap_override is not None:
        tc_cap = tc_cap_override

    c_pad128 = _round_up(c, 128)
    if c_pad128 <= tc_cap:
        n_shards, tiles_per_shard, tc = 1, 1, c_pad128
    else:
        n_shards = 2                      # leading "parallel" axis -> 2 TCs on v7x
        n_total = _round_up(-(-c_pad128 // tc_cap), n_shards)
        tc = _round_up(-(-c_pad128 // n_total), 128)
        tiles_per_shard = n_total // n_shards
    c_pad = tc * n_shards * tiles_per_shard

    vmem_needed = (2 * tc * d_pad * itemsize          # streamed centers (2 bufs)
                   + resident                          # resident inputs
                   + 8 * b_pad * 4                     # [B,1] scratch accumulators
                   + 2 * n_shards * 8 * 128 * 4)       # partial-output blocks
    vmem_limit = int(min(max(vmem_needed + 4 * 1024 * 1024, 16 * 1024 * 1024),
                         48 * 1024 * 1024))

    kernel = functools.partial(
        _global_push_plus_kernel,
        soft_margin=soft_margin, b_real=b, c_real=c, tile_c=tc,
        b_padded=(b_pad != b), c_padded=(c_pad != c))

    gpp_call = pl.pallas_call(
        kernel,
        out_shape=jax.ShapeDtypeStruct((n_shards, 8, 128), jnp.float32),
        grid=(n_shards, tiles_per_shard),
        in_specs=[
            pl.BlockSpec((b_pad, d_pad), lambda s, j: (0, 0)),   # features (resident)
            pl.BlockSpec((b_pad, d_pad), lambda s, j: (0, 0)),   # centers[labels]
            pl.BlockSpec((b_pad, 1), lambda s, j: (0, 0)),       # labels (resident)
            pl.BlockSpec((tc, d_pad),                            # centers stream
                         lambda s, j: (s * tiles_per_shard + j, 0)),
            pl.BlockSpec(memory_space=pltpu.MemorySpace.SMEM),   # margin scalar
        ],
        out_specs=pl.BlockSpec((1, 8, 128), lambda s, j: (s, 0, 0)),
        scratch_shapes=[
            pltpu.VMEM((b_pad, 1), jnp.float32),   # inv row norms
            pltpu.VMEM((b_pad, 1), jnp.float32),   # pos_sim (padded rows -> 1e30)
            pltpu.VMEM((b_pad, 1), jnp.float32),   # per-row loss-sum accumulator
            pltpu.VMEM((b_pad, 1), jnp.float32),   # per-row valid-pair count
        ],
        compiler_params=pltpu.CompilerParams(
            dimension_semantics=("parallel", "arbitrary"),
            vmem_limit_bytes=vmem_limit),
    )

    def fn(features, centers, labels, margin_arr):
        labels = labels.astype(jnp.int32)
        centers = centers.astype(features.dtype)
        batch_centers = jnp.take(centers, labels, axis=0)        # centers[labels, :]
        if d_pad != d:
            features = jnp.pad(features, ((0, 0), (0, d_pad - d)))
            batch_centers = jnp.pad(batch_centers, ((0, 0), (0, d_pad - d)))
            centers = jnp.pad(centers, ((0, 0), (0, d_pad - d)))
        if b_pad != b:
            features = jnp.pad(features, ((0, b_pad - b), (0, 0)))
            batch_centers = jnp.pad(batch_centers, ((0, b_pad - b), (0, 0)))
            labels = jnp.pad(labels, ((0, b_pad - b),))
        labels_2d = labels.reshape(b_pad, 1)
        if c_pad != c:
            centers = jnp.pad(centers, ((0, c_pad - c), (0, 0)))
        part = gpp_call(features, batch_centers, labels_2d, centers, margin_arr)
        loss_sum = jnp.sum(part[:, 0, 0])
        num_valid = jnp.sum(part[:, 0, 1])
        return jnp.where(num_valid > 0.0,
                         loss_sum / jnp.maximum(num_valid, 1.0), 0.0)

    return jax.jit(fn)


class GlobalPushPlus:
    """JAX/Pallas port of the Global Push Plus loss."""

    def __init__(self, margin=0.6, soft_margin=False, stream_bf16=False):
        self.min_margin = 0.15
        self.max_margin = margin
        self.num_calls = 0
        self.soft_margin = soft_margin
        # Optional: stream features/centers in bf16 (halves HBM bytes on this
        # bandwidth-bound kernel).  Off by default to preserve f32 accuracy.
        self.stream_bf16 = stream_bf16

    def __call__(self, features, centers, labels):
        self.num_calls += 1
        # Margin schedule stays host-side (matches PyTorch); passed as a traced
        # scalar so the jit/pallas cache is never invalidated by it.
        margin = self.min_margin + float(self.num_calls) / 40000.0 * (
            self.max_margin - self.min_margin)
        margin = min(margin, self.max_margin)
        margin_arr = jnp.full((1, 1), margin, dtype=jnp.float32)

        if self.stream_bf16 and features.dtype == jnp.float32:
            features = features.astype(jnp.bfloat16)

        b, d = features.shape
        c = centers.shape[0]
        fn = _build_gpp_fn(b, d, c, jnp.dtype(features.dtype).name,
                           bool(self.soft_margin))
        return fn(features, centers, labels, margin_arr)


def _reference(features, centers, labels, margin, soft_margin=False):
    f = features / jnp.maximum(
        jnp.linalg.norm(features, axis=1, keepdims=True), 1e-12)
    batch_centers = centers[labels, :]
    center_ids = jnp.arange(centers.shape[0], dtype=jnp.int32)
    diff = labels.reshape(-1, 1) != center_ids.reshape(1, -1)
    pos = 1.0 - jnp.sum(f * batch_centers, axis=1)
    neg = 1.0 - f @ centers.T
    if soft_margin:
        losses = jax.nn.softplus(pos.reshape(-1, 1) - neg)
    else:
        losses = margin + pos.reshape(-1, 1) - neg
    valid = (diff & (losses > 0.0)).astype(jnp.float32)
    nv = jnp.sum(valid)
    return jnp.where(nv > 0, jnp.sum(losses * valid) / nv, 0.0)


if __name__ == "__main__":
    key = jax.random.PRNGKey(0)
    k1, k2, k3, k4, k5 = jax.random.split(key, 5)

    B, D, C = 8, 32, 4  # batch, feature dim, number of class centers
    features = jax.random.normal(k1, (B, D), dtype=jnp.float32)
    centers = jax.random.normal(k2, (C, D), dtype=jnp.float32)
    centers = centers / jnp.linalg.norm(centers, axis=1, keepdims=True)
    labels = jax.random.randint(k3, (B,), 0, C, dtype=jnp.int32)

    margin_used = min(0.15 + 1.0 / 40000.0 * (0.6 - 0.15), 0.6)

    # hard-margin path
    loss_mod = GlobalPushPlus(margin=0.6, soft_margin=False)
    loss = jax.block_until_ready(loss_mod(features, centers, labels))
    ref = _reference(features, centers, labels, margin_used, soft_margin=False)
    assert jnp.allclose(loss, ref, atol=1e-5, rtol=1e-5), (loss, ref)

    # soft-margin path
    loss_soft_mod = GlobalPushPlus(margin=0.6, soft_margin=True)
    loss_soft = jax.block_until_ready(loss_soft_mod(features, centers, labels))
    ref_soft = _reference(features, centers, labels, margin_used, soft_margin=True)
    assert jnp.allclose(loss_soft, ref_soft, atol=1e-5, rtol=1e-5), (loss_soft, ref_soft)

    # row-padding path (B not a multiple of the sublane pad)
    feats6, labels6 = features[:6], labels[:6]
    loss6_mod = GlobalPushPlus(margin=0.6, soft_margin=False)
    loss6 = jax.block_until_ready(loss6_mod(feats6, centers, labels6))
    ref6 = _reference(feats6, centers, labels6, margin_used, soft_margin=False)
    assert jnp.allclose(loss6, ref6, atol=1e-5, rtol=1e-5), (loss6, ref6)

    # multi-tile / dual-shard ("parallel" C split) path, exercised cheaply with
    # a forced small tile cap so the sharded index math is validated.
    C2 = 300
    centers2 = jax.random.normal(k4, (C2, D), dtype=jnp.float32)
    labels2 = jax.random.randint(k5, (B,), 0, C2, dtype=jnp.int32)
    margin_arr = jnp.full((1, 1), margin_used, dtype=jnp.float32)
    for soft in (False, True):
        fn = _build_gpp_fn(B, D, C2, "float32", soft, 128)
        got = jax.block_until_ready(fn(features, centers2, labels2, margin_arr))
        want = _reference(features, centers2, labels2, margin_used, soft_margin=soft)
        assert jnp.allclose(got, want, atol=5e-4, rtol=5e-4), (soft, got, want)

    print("KERNEL_OK")
</pallas_src>

<mosaic_0001>
module attributes {stable_mosaic.version = 11 : i64} {
  func.func @_global_push_plus_kernel(%arg0: i32, %arg1: i32, %arg2: memref<8x128xf32, #tpu.memory_space<vmem>>, %arg3: memref<8x128xf32, #tpu.memory_space<vmem>>, %arg4: memref<8x1xi32, #tpu.memory_space<vmem>>, %arg5: memref<128x128xf32, #tpu.memory_space<vmem>>, %arg6: memref<1x1xf32, #tpu.memory_space<smem>>, %arg7: memref<1x8x128xf32, #tpu.memory_space<vmem>>, %arg8: memref<8x1xf32, #tpu.memory_space<vmem>>, %arg9: memref<8x1xf32, #tpu.memory_space<vmem>>, %arg10: memref<8x1xf32, #tpu.memory_space<vmem>>, %arg11: memref<8x1xf32, #tpu.memory_space<vmem>>) attributes {dimension_semantics = [#tpu.dimension_semantics<parallel>, #tpu.dimension_semantics<arbitrary>], iteration_bounds = array<i64: 1, 1>, scalar_prefetch = 0 : i64, scratch_operands = 4 : i64, tpu.core_type = #tpu.core_type<tc>, window_params = [{pipeline_mode = #tpu.pipeline_mode<synchronous>, transform_indices = @transform_0, window_bounds = array<i64: 8, 128>}, {pipeline_mode = #tpu.pipeline_mode<synchronous>, transform_indices = @transform_1, window_bounds = array<i64: 8, 128>}, {pipeline_mode = #tpu.pipeline_mode<synchronous>, transform_indices = @transform_2, window_bounds = array<i64: 8, 1>}, {transform_indices = @transform_3, window_bounds = array<i64: 128, 128>}, {transform_indices = @transform_4, window_bounds = array<i64: 1, 1>}, {transform_indices = @transform_5, window_bounds = array<i64: 1, 8, 128>}]} {
    %c0_i32 = arith.constant 0 : i32
    %0 = arith.cmpi eq, %arg1, %c0_i32 : i32
    %1 = arith.extui %0 : i1 to i32
    %c0_i32_0 = arith.constant 0 : i32
    %2 = arith.cmpi ne, %1, %c0_i32_0 : i32
    scf.if %2 {
      %c0_25 = arith.constant 0 : index
      %c0_26 = arith.constant 0 : index
      %48 = vector.load %arg2[%c0_25, %c0_26] : memref<8x128xf32, #tpu.memory_space<vmem>>, vector<8x128xf32>
      %49 = arith.mulf %48, %48 : vector<8x128xf32>
      %cst_27 = arith.constant dense<0.000000e+00> : vector<8xf32>
      %50 = vector.multi_reduction <add>, %49, %cst_27 [1] : vector<8x128xf32> to vector<8xf32>
      %51 = vector.shape_cast %50 : vector<8xf32> to vector<8x1xf32>
      %cst_28 = arith.constant 1.000000e-24 : f32
      %52 = vector.broadcast %cst_28 : f32 to vector<8x1xf32>
      %53 = arith.maximumf %51, %52 : vector<8x1xf32>
      %54 = math.rsqrt %53 : vector<8x1xf32>
      %c0_29 = arith.constant 0 : index
      %c0_30 = arith.constant 0 : index
      %55 = vector.load %arg8[%c0_29, %c0_30] : memref<8x1xf32, #tpu.memory_space<vmem>>, vector<8x1xf32>
      tpu.vector_store %arg8[%c0_29, %c0_30], %54 {strides = array<i32>} : memref<8x1xf32, #tpu.memory_space<vmem>>, vector<8x1xf32>,
      %c0_31 = arith.constant 0 : index
      %c0_32 = arith.constant 0 : index
      %56 = vector.load %arg3[%c0_31, %c0_32] : memref<8x128xf32, #tpu.memory_space<vmem>>, vector<8x128xf32>
      %57 = arith.mulf %48, %56 : vector<8x128xf32>
      %cst_33 = arith.constant dense<0.000000e+00> : vector<8xf32>
      %58 = vector.multi_reduction <add>, %57, %cst_33 [1] : vector<8x128xf32> to vector<8xf32>
      %59 = vector.shape_cast %58 : vector<8xf32> to vector<8x1xf32>
      %60 = arith.mulf %59, %54 : vector<8x1xf32>
      %c0_34 = arith.constant 0 : index
      %c0_35 = arith.constant 0 : index
      %61 = vector.load %arg9[%c0_34, %c0_35] : memref<8x1xf32, #tpu.memory_space<vmem>>, vector<8x1xf32>
      tpu.vector_store %arg9[%c0_34, %c0_35], %60 {strides = array<i32>} : memref<8x1xf32, #tpu.memory_space<vmem>>, vector<8x1xf32>,
      %cst_36 = arith.constant 0.000000e+00 : f32
      %62 = vector.broadcast %cst_36 : f32 to vector<8x1xf32>
      %c0_37 = arith.constant 0 : index
      %c0_38 = arith.constant 0 : index
      %63 = vector.load %arg10[%c0_37, %c0_38] : memref<8x1xf32, #tpu.memory_space<vmem>>, vector<8x1xf32>
      tpu.vector_store %arg10[%c0_37, %c0_38], %62 {strides = array<i32>} : memref<8x1xf32, #tpu.memory_space<vmem>>, vector<8x1xf32>,
      %cst_39 = arith.constant 0.000000e+00 : f32
      %64 = vector.broadcast %cst_39 : f32 to vector<8x1xf32>
      %c0_40 = arith.constant 0 : index
      %c0_41 = arith.constant 0 : index
      %65 = vector.load %arg11[%c0_40, %c0_41] : memref<8x1xf32, #tpu.memory_space<vmem>>, vector<8x1xf32>
      tpu.vector_store %arg11[%c0_40, %c0_41], %64 {strides = array<i32>} : memref<8x1xf32, #tpu.memory_space<vmem>>, vector<8x1xf32>,
    } else {
    }
    %c0 = arith.constant 0 : index
    %c0_1 = arith.constant 0 : index
    %3 = vector.load %arg2[%c0, %c0_1] : memref<8x128xf32, #tpu.memory_space<vmem>>, vector<8x128xf32>
    %c0_2 = arith.constant 0 : index
    %c0_3 = arith.constant 0 : index
    %4 = vector.load %arg5[%c0_2, %c0_3] : memref<128x128xf32, #tpu.memory_space<vmem>>, vector<128x128xf32>
    %cst = arith.constant dense<0.000000e+00> : vector<8x128xf32>
    %5 = tpu.matmul %3, %4, %cst {dimension_numbers = #tpu.dot_dimension_numbers<[1], [1], [0], [0], [0, 0, 1, 0], [], []>} : vector<8x128xf32>, vector<128x128xf32>, vector<8x128xf32> -> vector<8x128xf32>
    %c0_4 = arith.constant 0 : index
    %c0_5 = arith.constant 0 : index
    %6 = vector.load %arg8[%c0_4, %c0_5] : memref<8x1xf32, #tpu.memory_space<vmem>>, vector<8x1xf32>
    %7 = vector.broadcast %6 : vector<8x1xf32> to vector<8x128xf32>
    %8 = arith.mulf %5, %7 : vector<8x128xf32>
    %c0_6 = arith.constant 0 : index
    %c0_7 = arith.constant 0 : index
    %9 = vector.load %arg9[%c0_6, %c0_7] : memref<8x1xf32, #tpu.memory_space<vmem>>, vector<8x1xf32>
    %10 = vector.broadcast %9 : vector<8x1xf32> to vector<8x128xf32>
    %11 = arith.subf %8, %10 : vector<8x128xf32>
    %c0_8 = arith.constant 0 : index
    %c0_9 = arith.constant 0 : index
    %12 = memref.load %arg6[%c0_8, %c0_9] : memref<1x1xf32, #tpu.memory_space<smem>>
    %13 = vector.broadcast %12 : f32 to vector<8x128xf32>
    %14 = arith.addf %13, %11 : vector<8x128xf32>
    %c1_i32 = arith.constant 1 : i32
    %15 = arith.muli %arg0, %c1_i32 : i32
    %16 = arith.addi %15, %arg1 : i32
    %17 = tpu.iota {dimensions = array<i32: 1>} : vector<1x128xi32>
    %c128_i32 = arith.constant 128 : i32
    %18 = arith.muli %16, %c128_i32 : i32
    %19 = vector.broadcast %18 : i32 to vector<1x128xi32>
    %20 = arith.addi %17, %19 : vector<1x128xi32>
    %c0_10 = arith.constant 0 : index
    %c0_11 = arith.constant 0 : index
    %21 = vector.load %arg4[%c0_10, %c0_11] : memref<8x1xi32, #tpu.memory_space<vmem>>, vector<8x1xi32>
    %22 = vector.broadcast %21 : vector<8x1xi32> to vector<8x128xi32>
    %23 = vector.broadcast %20 : vector<1x128xi32> to vector<8x128xi32>
    %24 = arith.cmpi ne, %22, %23 : vector<8x128xi32>
    %cst_12 = arith.constant 0.000000e+00 : f32
    %25 = vector.broadcast %cst_12 : f32 to vector<8x128xf32>
    %26 = arith.cmpf ogt, %14, %25 : vector<8x128xf32>
    %27 = arith.andi %24, %26 : vector<8x128xi1>
    %c4_i32 = arith.constant 4 : i32
    %28 = vector.broadcast %c4_i32 : i32 to vector<1x128xi32>
    %29 = arith.cmpi slt, %20, %28 : vector<1x128xi32>
    %30 = vector.broadcast %29 : vector<1x128xi1> to vector<8x128xi1>
    %31 = arith.andi %27, %30 : vector<8x128xi1>
    %32 = arith.extui %31 : vector<8x128xi1> to vector<8x128xi32>
    %33 = arith.sitofp %32 : vector<8x128xi32> to vector<8x128xf32>
    %c0_13 = arith.constant 0 : index
    %c0_14 = arith.constant 0 : index
    %34 = vector.load %arg10[%c0_13, %c0_14] : memref<8x1xf32, #tpu.memory_space<vmem>>, vector<8x1xf32>
    %35 = arith.mulf %14, %33 : vector<8x128xf32>
    %cst_15 = arith.constant dense<0.000000e+00> : vector<8xf32>
    %36 = vector.multi_reduction <add>, %35, %cst_15 [1] : vector<8x128xf32> to vector<8xf32>
    %37 = vector.shape_cast %36 : vector<8xf32> to vector<8x1xf32>
    %38 = arith.addf %34, %37 : vector<8x1xf32>
    %c0_16 = arith.constant 0 : index
    %c0_17 = arith.constant 0 : index
    %39 = vector.load %arg10[%c0_16, %c0_17] : memref<8x1xf32, #tpu.memory_space<vmem>>, vector<8x1xf32>
    tpu.vector_store %arg10[%c0_16, %c0_17], %38 {strides = array<i32>} : memref<8x1xf32, #tpu.memory_space<vmem>>, vector<8x1xf32>,
    %c0_18 = arith.constant 0 : index
    %c0_19 = arith.constant 0 : index
    %40 = vector.load %arg11[%c0_18, %c0_19] : memref<8x1xf32, #tpu.memory_space<vmem>>, vector<8x1xf32>
    %cst_20 = arith.constant dense<0.000000e+00> : vector<8xf32>
    %41 = vector.multi_reduction <add>, %33, %cst_20 [1] : vector<8x128xf32> to vector<8xf32>
    %42 = vector.shape_cast %41 : vector<8xf32> to vector<8x1xf32>
    %43 = arith.addf %40, %42 : vector<8x1xf32>
    %c0_21 = arith.constant 0 : index
    %c0_22 = arith.constant 0 : index
    %44 = vector.load %arg11[%c0_21, %c0_22] : memref<8x1xf32, #tpu.memory_space<vmem>>, vector<8x1xf32>
    tpu.vector_store %arg11[%c0_21, %c0_22], %43 {strides = array<i32>} : memref<8x1xf32, #tpu.memory_space<vmem>>, vector<8x1xf32>,
    %c0_i32_23 = arith.constant 0 : i32
    %45 = arith.cmpi eq, %arg1, %c0_i32_23 : i32
    %46 = arith.extui %45 : i1 to i32
    %c0_i32_24 = arith.constant 0 : i32
    %47 = arith.cmpi ne, %46, %c0_i32_24 : i32
    scf.if %47 {
      %c0_25 = arith.constant 0 : index
      %c0_26 = arith.constant 0 : index
      %48 = vector.load %arg10[%c0_25, %c0_26] : memref<8x1xf32, #tpu.memory_space<vmem>>, vector<8x1xf32>
      %49 = vector.shape_cast %48 : vector<8x1xf32> to vector<1x8x1xf32>
      %cst_27 = arith.constant dense<0.000000e+00> : vector<1xf32>
      %50 = vector.multi_reduction <add>, %49, %cst_27 [1, 2] : vector<1x8x1xf32> to vector<1xf32>
      %51 = vector.shape_cast %50 : vector<1xf32> to vector<1x1x1xf32>
      %52 = vector.extract %51[0, 0, 0] : f32 from vector<1x1x1xf32>
      %c0_28 = arith.constant 0 : index
      %c0_29 = arith.constant 0 : index
      %53 = vector.load %arg11[%c0_28, %c0_29] : memref<8x1xf32, #tpu.memory_space<vmem>>, vector<8x1xf32>
      %54 = vector.shape_cast %53 : vector<8x1xf32> to vector<1x8x1xf32>
      %cst_30 = arith.constant dense<0.000000e+00> : vector<1xf32>
      %55 = vector.multi_reduction <add>, %54, %cst_30 [1, 2] : vector<1x8x1xf32> to vector<1xf32>
      %56 = vector.shape_cast %55 : vector<1xf32> to vector<1x1x1xf32>
      %57 = vector.extract %56[0, 0, 0] : f32 from vector<1x1x1xf32>
      %58 = tpu.iota {dimensions = array<i32: 1>} : vector<8x128xi32>
      %c0_i32_31 = arith.constant 0 : i32
      %59 = vector.broadcast %c0_i32_31 : i32 to vector<8x128xi32>
      %60 = arith.cmpi eq, %58, %59 : vector<8x128xi32>
      %c1_i32_32 = arith.constant 1 : i32
      %61 = vector.broadcast %c1_i32_32 : i32 to vector<8x128xi32>
      %62 = arith.cmpi eq, %58, %61 : vector<8x128xi32>
      %cst_33 = arith.constant 0.000000e+00 : f32
      %63 = vector.broadcast %57 : f32 to vector<8x128xf32>
      %64 = vector.broadcast %cst_33 : f32 to vector<8x128xf32>
      %65 = arith.select %62, %63, %64 : vector<8x128xi1>, vector<8x128xf32>
      %66 = vector.broadcast %52 : f32 to vector<8x128xf32>
      %67 = arith.select %60, %66, %65 : vector<8x128xi1>, vector<8x128xf32>
      %c0_34 = arith.constant 0 : index
      %c0_35 = arith.constant 0 : index
      %c0_36 = arith.constant 0 : index
      %68 = vector.load %arg7[%c0_34, %c0_35, %c0_36] : memref<1x8x128xf32, #tpu.memory_space<vmem>>, vector<1x8x128xf32>
      %69 = vector.shape_cast %68 : vector<1x8x128xf32> to vector<8x128xf32>
      %70 = vector.shape_cast %67 : vector<8x128xf32> to vector<1x8x128xf32>
      tpu.vector_store %arg7[%c0_34, %c0_35, %c0_36], %70 {strides = array<i32>} : memref<1x8x128xf32, #tpu.memory_space<vmem>>, vector<1x8x128xf32>,
    } else {
    }
    return
  }
  func.func @transform_0(%arg0: i32, %arg1: i32) -> (i32, i32) {
    %c0_i32 = arith.constant 0 : i32
    %c0_i32_0 = arith.constant 0 : i32
    %c0_i32_1 = arith.constant 0 : i32
    return %c0_i32, %c0_i32_0 : i32, i32
  }
  func.func @transform_1(%arg0: i32, %arg1: i32) -> (i32, i32) {
    %c0_i32 = arith.constant 0 : i32
    %c0_i32_0 = arith.constant 0 : i32
    %c0_i32_1 = arith.constant 0 : i32
    return %c0_i32, %c0_i32_0 : i32, i32
  }
  func.func @transform_2(%arg0: i32, %arg1: i32) -> (i32, i32) {
    %c0_i32 = arith.constant 0 : i32
    %c0_i32_0 = arith.constant 0 : i32
    %c0_i32_1 = arith.constant 0 : i32
    return %c0_i32, %c0_i32_0 : i32, i32
  }
  func.func @transform_3(%arg0: i32, %arg1: i32) -> (i32, i32) {
    %c1_i32 = arith.constant 1 : i32
    %0 = arith.muli %arg0, %c1_i32 : i32
    %1 = arith.addi %0, %arg1 : i32
    %c0_i32 = arith.constant 0 : i32
    %c0_i32_0 = arith.constant 0 : i32
    return %1, %c0_i32 : i32, i32
  }
  func.func @transform_4(%arg0: i32, %arg1: i32) -> (i32, i32) {
    %c0_i32 = arith.constant 0 : i32
    %c0_i32_0 = arith.constant 0 : i32
    %c0_i32_1 = arith.constant 0 : i32
    return %c0_i32, %c0_i32_0 : i32, i32
  }
  func.func @transform_5(%arg0: i32, %arg1: i32) -> (i32, i32, i32) {
    %c0_i32 = arith.constant 0 : i32
    %c0_i32_0 = arith.constant 0 : i32
    %c0_i32_1 = arith.constant 0 : i32
    return %arg0, %c0_i32, %c0_i32_0 : i32, i32, i32
  }
}

</mosaic_0001>

<bundles_post_ra>
// kernel: fn.1
= control target key start
LH: loop header
LB: loop body
LE: loop exit
PB: predicated region body
PF: predicated region fallthrough
CT: control target
= control target key end

     0   :  { %v211_v20 = vmov 0   ;;  %vm62_vm2 = vcmask 7168   ;;  %v212_v35 = vmov 0.0   ;;  %v127_v37 = vlaneseq  ;;  %s314_s0 = inlined_call_operand.vmem [shape: f32[8,128], index: 0, kind: input, shape index: {}]   ;;  %s315_s3 = inlined_call_operand.vmem [shape: f32[128,128], index: 3, kind: input, shape index: {}]   ;;  %s316_s1 = inlined_call_operand.vmem [shape: f32[8,128], index: 1, kind: input, shape index: {}]   ;;  %s317_s2 = inlined_call_operand.vmem [shape: s32[8,1], index: 2, kind: input, shape index: {}]   ;;  %s318_s4 = inlined_call_operand.<no memory space> [shape: f32[1,1], index: 4, kind: input, shape index: {}]   ;;  %s319_s5 = inlined_call_operand.vmem [shape: f32[1,8,128], index: 5, kind: output, shape index: {}]  }
   0x1   :  { %v47_v0 = vld [vmem:[%s314_s0] sm:$0xff]  ;;  %v88_v1 = vld [vmem:[%s315_s3 + $0x78] sm:$0xff]  ;;  %v87_v3 = vld [vmem:[%s315_s3 + $0x70] sm:$0xff]  ;;  %206 = vset.pattern.permute.xlu1 %v211_v20  ;;  %207 = vset.pattern.permute.xlu2 %v211_v20  ;;  %70 = vst.msk [vmem:[#allocation4] sm:$0xff] %vm62_vm2, %v212_v35  ;;  %v124_v41 = vstv %s318_s4 }
   0x2   :  { %v48_v2 = vmul.f32 %v47_v0, %v47_v0  ;;  %89 = vmatpush.xpose.msra.mxu0 %v88_v1  ;;  %v64_v4 = vld [vmem:[%s316_s1] sm:$0xff]  ;;  %v86_v5 = vld [vmem:[%s315_s3 + $0x68] sm:$0xff]  ;;  %v84_v8 = vld [vmem:[%s315_s3 + $0x58] sm:$0xff]  ;;  %208 = vset.pattern.permute.xlu0 %v211_v20  ;;  %71 = vst.msk [vmem:[#allocation5] sm:$0xff] %vm62_vm2, %v212_v35  ;;  %v128_v40 = vand.u32 127, %v127_v37 }
   0x3   :  { %v65_v6 = vmul.f32 %v64_v4, %v47_v0  ;;  %v85_v7 = vld [vmem:[%s315_s3 + $0x60] sm:$0xff]  ;;  %v83_v9 = vld [vmem:[%s315_s3 + $0x50] sm:$0xff]  ;;  %v82_v10 = vld [vmem:[%s315_s3 + $0x48] sm:$0xff] }
   0x4   :  { %49 = vadd.xlane.f32.xlu0 %v48_v2  ;;  %v81_v11 = vld [vmem:[%s315_s3 + $0x40] sm:$0xff]  ;;  %v80_v12 = vld [vmem:[%s315_s3 + $0x38] sm:$0xff]  ;;  %v79_v13 = vld [vmem:[%s315_s3 + $0x30] sm:$0xff]  ;;  %vm139_vm5 = vcmp.lt.s32.totalorder %v128_v40, 4  ;;  %vm183_vm9 = vcmp.eq.s32.totalorder %v128_v40, 1  ;;  %vm182_vm10 = vcmp.eq.s32.totalorder %v128_v40, 0 }
   0x5   :  { %v78_v14 = vld [vmem:[%s315_s3 + $0x28] sm:$0xff]  ;;  %v77_v15 = vld [vmem:[%s315_s3 + $0x20] sm:$0xff]  ;;  %v76_v16 = vld [vmem:[%s315_s3 + $0x18] sm:$0xff] }
   0x6   :  { %90 = vmatpush.xpose.msra.mxu0 %v87_v3  ;;  %v75_v17 = vld [vmem:[%s315_s3 + $0x10] sm:$0xff]  ;;  %v74_v18 = vld [vmem:[%s315_s3 + $0x8] sm:$0xff]  ;;  %v73_v19 = vld [vmem:[%s315_s3] sm:$0xff] }
   0x7   :  { %v132_v23 = vld [vmem:[%s317_s2] sm:$0xff] }
   0x8   :  { %134 = vperm.xlu2 %207, %v132_v23   ;;  %v145_v50 = vld [vmem:[#allocation4] sm:$0xff] }
   0x9   :  { %v152_v48 = vld [vmem:[#allocation5] sm:$0xff] }
   0xa   :  { %91 = vmatpush.xpose.msra.mxu0 %v86_v5 }
   0xc   :  { %66 = vadd.xlane.f32.xlu0 %v65_v6 }
   0xe   :  { %92 = vmatpush.xpose.msra.mxu0 %v85_v7 }
  0x12   :  { %93 = vmatpush.xpose.msra.mxu0 %v84_v8 }
  0x16   :  { %94 = vmatpush.xpose.msra.mxu0 %v83_v9 }
  0x1a   :  { %95 = vmatpush.xpose.msra.mxu0 %v82_v10 }
  0x1e   :  { %96 = vmatpush.xpose.msra.mxu0 %v81_v11 }
  0x22   :  { %97 = vmatpush.xpose.msra.mxu0 %v80_v12 }
  0x26   :  { %98 = vmatpush.xpose.msra.mxu0 %v79_v13 }
  0x2a   :  { %99 = vmatpush.xpose.msra.mxu0 %v78_v14 }
  0x2e   :  { %100 = vmatpush.xpose.msra.mxu0 %v77_v15 }
  0x32   :  { %101 = vmatpush.xpose.msra.mxu0 %v76_v16 }
  0x36   :  { %102 = vmatpush.xpose.msra.mxu0 %v75_v17 }
  0x3a   :  { %103 = vmatpush.xpose.msra.mxu0 %v74_v18 }
  0x3e   :  { %104 = vmatpush.xpose.msra.mxu0 %v73_v19 }
  0x41   :  { %105 = vmatmul.f32.vlgmr.msra.gmra.mxu0 %v47_v0 }
  0x62   :  { %v135_v43 = vpop.permute.xlu2 %134 }
  0x63   :  { %vm136_vm4 = vcmp.ne.s32.totalorder %v135_v43, %v128_v40 }
  0x77   :  { %v50_v21 = vpop.xlane.xlu0 %49 }
  0x78   :  { %v51_v22 = vmax.f32 %v50_v21, 1e-24 }
  0x7a   :  { %209 = vrsqrt.f32 %v51_v22  ;;  %vm58_vm1 = vweird.f32 %v51_v22 }
  0x7f   :  { %v67_v30 = vpop.xlane.xlu0 %66 }
  0x80   :  { %v210_v24 = vpop.eup %209 }
  0x81   :  { %v53_v25 = vmul.f32 %v210_v24, %v51_v22  ;;  %vm59_vm0 = vweird.f32 %v210_v24 }
  0x82   :  { %vm60_vm3 = vmor %vm58_vm1, %vm59_vm0 }
  0x83   :  { %v54_v26 = vmul.f32 %v210_v24, %v53_v25 }
  0x85   :  { %v55_v27 = vmul.f32 0.5, %v54_v26 }
  0x87   :  { %v56_v28 = vsub.f32 1.5, %v55_v27 }
  0x89   :  { %v57_v29 = vmul.f32 %v210_v24, %v56_v28 }
  0x8b   :  { %v61_v31 = vsel %vm60_vm3, %v210_v24, %v57_v29 }
  0x8c   :  { %63 = vst.msk [vmem:[#allocation2] sm:$0xff] %vm62_vm2, %v61_v31  ;;  %v68_v32 = vmul.f32 %v67_v30, %v61_v31 }
  0x8e   :  { %69 = vst.msk [vmem:[#allocation3] sm:$0xff] %vm62_vm2, %v68_v32 }
  0x93   :  { %v109_v33 = vld [vmem:[#allocation2] sm:$0xff] }
  0x94   :  { %112 = vperm.xlu1 %206, %v109_v33  }
  0x95   :  { %v116_v34 = vld [vmem:[#allocation3] sm:$0xff] }
  0x9c   :  { %119 = vperm.xlu1 %206, %v116_v34  }
  0xbe   :  { %v106_v38 = vpop.f32.mrf.mxu0 }
 0x106   :  { %v113_v36 = vpop.permute.xlu1 %112 }
 0x107   :  { %v115_v39 = vmul.f32 %v113_v36, %v106_v38 }
 0x10e   :  { %v120_v42 = vpop.permute.xlu1 %119 }
 0x10f   :  { %v122_v44 = vsub.f32 %v115_v39, %v120_v42 }
 0x111   :  { %v125_v45 = vadd.f32 %v124_v41, %v122_v44 }
 0x113   :  { %vm137_vm6 = vcmp.gt.f32.partialorder %v125_v45, 0.0 }
 0x114   :  { %vm138_vm7 = vmand %vm136_vm4, %vm137_vm6 }
 0x115   :  { %vm142_vm8 = vmand %vm138_vm7, %vm139_vm5 }
 0x116   :  { %v199_v46 = vsel %vm142_vm8, 1.0, %v212_v35 }
 0x117   :  { %153 = vadd.xlane.f32.xlu0 %v199_v46  ;;  %v146_v47 = vmul.f32 %v199_v46, %v125_v45 }
 0x119   :  { %147 = vadd.xlane.f32.xlu2 %v146_v47 }
 0x18a   :  { %v154_v49 = vpop.xlane.xlu0 %153 }
 0x18b   :  { %v155_v51 = vadd.f32 %v154_v49, %v152_v48 }
 0x18c   :  { %v148_v52 = vpop.xlane.xlu2 %147 }
 0x18d   :  { %156 = vst.msk [vmem:[#allocation5] sm:$0xff] %vm62_vm2, %v155_v51  ;;  %v149_v53 = vadd.f32 %v148_v52, %v145_v50 }
 0x18f   :  { %151 = vst.msk [vmem:[#allocation4] sm:$0xff] %vm62_vm2, %v149_v53 }
 0x194   :  { %v171_v54 = vld [vmem:[#allocation5] sm:$0xff] }
 0x195   :  { %v172_v55 = vsel %vm62_vm2, %v171_v54, 0.0 }
 0x196   :  { %173 = vadd.xlane.f32.xlu0 %v172_v55  ;;  %v160_v56 = vld [vmem:[#allocation4] sm:$0xff] }
 0x197   :  { %v161_v57 = vsel %vm62_vm2, %v160_v56, 0.0 }
 0x198   :  { %162 = vadd.xlane.f32.xlu1 %v161_v57 }
 0x209   :  { %v174_v58 = vpop.xlane.xlu0 %173 }
 0x20a   :  { %v175_v59 = vrot.slane %v174_v58, 4 }
 0x20b   :  { %v163_v60 = vpop.xlane.xlu1 %162 }
 0x20c   :  { %v176_v61 = vadd.f32 %v175_v59, %v174_v58  ;;  %v164_v62 = vrot.slane %v163_v60, 4 }
 0x20e   :  { %v177_v63 = vrot.slane %v176_v61, 2  ;;  %v165_v0 = vadd.f32 %v164_v62, %v163_v60 }
 0x210   :  { %v178_v1 = vadd.f32 %v177_v63, %v176_v61  ;;  %v166_v2 = vrot.slane %v165_v0, 2 }
 0x212   :  { %v167_v3 = vadd.f32 %v166_v2, %v165_v0  ;;  %v179_v4 = vrot.slane %v178_v1, 1 }
 0x214   :  { %v168_v5 = vrot.slane %v167_v3, 1  ;;  %v180_v7 = vadd.f32 %v179_v4, %v178_v1 }
 0x216   :  { %v169_v6 = vadd.f32 %v168_v5, %v167_v3 }
 0x218   :  { %200 = vpush %v169_v6 }
 0x219   :  { %202 = vpush %v180_v7 }
 0x249   :  { %s201_s4 = spop %200 }
 0x24a   :  { %v186_v8 = vstv %s201_s4  ;;  %s203_s28 = spop %202 }
 0x24b   :  { %v184_v9 = vstv %s203_s28 }
 0x24c   :  { %v185_v10 = vsel %vm183_vm9, %v184_v9, 0.0 }
 0x24d   :  { %v187_v11 = vsel %vm182_vm10, %v186_v8, %v185_v10 }
 0x24e   :  { %188 = vst [vmem:[%s319_s5] sm:$0xff] %v187_v11 }

</bundles_post_ra>
